<compile_context>
chip_gen: v6e
topology: v6e:2x2x1
jax: 0.10.0
libtpu: 0.0.40
codegen_flags: <defaults>
</compile_context>

<pallas_src>
import functools

import jax
import jax.numpy as jnp
from jax.experimental import pallas as pl
from jax.experimental.pallas import tpu as pltpu

POOL_H, POOL_W = 8, 10
C_IN, C_OUT = 2048, 27


# ------------------------------ Pallas kernel -------------------------------

def _gp_kernel(x_ref, p_ref, w_ref, b_ref, o_ref, acc_ref, *, inv_area):
    # x_ref : (1, c_blk, HW)    native NCHW activation slab for batch n
    # p_ref : (HW, HoWo)        0/1 pooling matrix (grid-invariant, resident)
    # w_ref : (27, c_blk)       1x1-conv weight block (PyTorch layout)
    # b_ref : (27, 1)           conv bias
    # o_ref : (1, 27, HoWo)     pooled + convolved output for batch n
    # acc_ref: (27, HW) f32     accumulator over channel blocks
    c = pl.program_id(1)

    @pl.when(c == 0)
    def _init():
        acc_ref[...] = jnp.zeros_like(acc_ref)

    # 1x1 conv on native-layout data: (27, c_blk) @ (c_blk, HW) on the MXU,
    # f32 accumulation.  N = HW output lanes -> fully lane-dense MXU use.
    acc_ref[...] += jnp.dot(w_ref[...], x_ref[0],
                            preferred_element_type=jnp.float32)

    @pl.when(c == pl.num_programs(1) - 1)
    def _finalize():
        # Window sums via one tiny MXU matmul against the 0/1 pooling matrix
        # (once per batch), then the static 1/80 scale and the bias.
        pooled = jnp.dot(acc_ref[...], p_ref[...],
                         preferred_element_type=jnp.float32)     # (27, HoWo)
        o_ref[0, :, :] = (pooled * inv_area + b_ref[...]).astype(o_ref.dtype)


# ------------------------------- wrapper ------------------------------------

def _pick_c_block(hw, itemsize, budget_bytes=8 << 20):
    """Largest 128-multiple divisor of 2048 whose x tile fits the budget."""
    for cb in (2048, 1024, 512, 256, 128):
        if cb * hw * itemsize <= budget_bytes:
            return cb
    # Very large spatial maps would also want HW tiling; the GP head only ever
    # sees small post-backbone feature maps, so the smallest block suffices.
    return 128


def gp_forward(x_nchw, w, b, *, c_block=None):
    """Fused AvgPool2d((8,10)) + Conv2d(2048 -> 27, 1x1, bias).

    x_nchw: (N, 2048, H, W) activations (f32 or bf16), native NCHW.
    w     : (27, 2048)  = conv0.weight[:, :, 0, 0] (PyTorch layout).
    b     : (27,)       = conv0.bias.
    Returns (N, 27, H // 8, W // 10), NCHW, matching the PyTorch module.
    """
    N, C, H, W = x_nchw.shape
    assert C == C_IN, f"GP expects {C_IN} input channels, got {C}"
    Ho, Wo = H // POOL_H, W // POOL_W
    assert Ho >= 1 and Wo >= 1, "input smaller than the (8, 10) pool window"
    HW, HoWo = H * W, Ho * Wo

    itemsize = jnp.dtype(x_nchw.dtype).itemsize
    c_blk = c_block if c_block is not None else _pick_c_block(HW, itemsize)
    assert C % c_blk == 0 and c_blk % 128 == 0
    n_cblk = C // c_blk

    # Free reshape (collapses the two trailing contiguous dims): no HBM copy.
    x = x_nchw.reshape(N, C, HW)
    w2 = w.reshape(C_OUT, C_IN)
    b2 = b.reshape(C_OUT, 1)

    # Pooling matrix: P[h*W + w, oh*Wo + ow] = 1 iff (h, w) lies inside pool
    # window (oh, ow).  Floor-cropped remainder rows/cols map to all-zero rows
    # (matches PyTorch AvgPool2d semantics) so x never needs cropping/copying.
    hh = jnp.arange(H)[:, None]
    ww = jnp.arange(W)[None, :]
    col = (hh // POOL_H) * Wo + (ww // POOL_W)                     # (H, W)
    valid = (hh < Ho * POOL_H) & (ww < Wo * POOL_W)                # (H, W)
    pool_mat = ((col[:, :, None] == jnp.arange(HoWo)) & valid[:, :, None])
    pool_mat = pool_mat.reshape(HW, HoWo).astype(jnp.float32)

    # Explicit VMEM budget (double-buffered inputs + f32 accumulator), capped
    # at 48 MiB so it stays comfortably inside v7x's 64 MiB physical VMEM.
    lane = lambda d: ((d + 127) // 128) * 128
    sub = lambda d: ((d + 7) // 8) * 8
    x_tile_b = c_blk * lane(HW) * itemsize
    w_tile_b = sub(C_OUT) * c_blk * jnp.dtype(w2.dtype).itemsize
    p_b = sub(HW) * lane(HoWo) * 4
    acc_b = sub(C_OUT) * lane(HW) * 4
    vmem_limit = int(min(48 << 20,
                         max(16 << 20,
                             2 * (x_tile_b + w_tile_b + p_b) + acc_b
                             + (2 << 20))))

    out = pl.pallas_call(
        functools.partial(_gp_kernel, inv_area=1.0 / (POOL_H * POOL_W)),
        out_shape=jax.ShapeDtypeStruct((N, C_OUT, HoWo), x_nchw.dtype),
        grid=(N, n_cblk),
        in_specs=[
            pl.BlockSpec((1, c_blk, HW), lambda n, c: (n, c, 0)),   # x slab
            pl.BlockSpec((HW, HoWo), lambda n, c: (0, 0)),          # pool mat
            pl.BlockSpec((C_OUT, c_blk), lambda n, c: (0, c)),      # weight
            pl.BlockSpec((C_OUT, 1), lambda n, c: (0, 0)),          # bias
        ],
        out_specs=pl.BlockSpec((1, C_OUT, HoWo), lambda n, c: (n, 0, 0)),
        scratch_shapes=[pltpu.VMEM((C_OUT, HW), jnp.float32)],
        compiler_params=pltpu.CompilerParams(
            dimension_semantics=("parallel", "arbitrary"),  # batch // 2 TCs on v7x
            vmem_limit_bytes=vmem_limit,
        ),
    )(x, pool_mat, w2, b2)

    # Free reshape: (N, 27, Ho*Wo) -> (N, 27, Ho, Wo) NCHW output.
    return out.reshape(N, C_OUT, Ho, Wo)


# --------------------------------- demo -------------------------------------

if __name__ == "__main__":
    key = jax.random.PRNGKey(0)
    kx, kw, kb = jax.random.split(key, 3)

    # Small shapes consistent with the module: conv0 mandates 2048 input
    # channels; spatial (16, 20) -> pooled (2, 2); batch 2.
    N, H, W = 2, 16, 20
    x = jax.random.normal(kx, (N, C_IN, H, W), jnp.float32)

    # conv0.weight[:, :, 0, 0] and conv0.bias, in PyTorch layout.
    w = jax.random.normal(kw, (C_OUT, C_IN), jnp.float32) / jnp.sqrt(
        jnp.float32(C_IN))
    b = jax.random.normal(kb, (C_OUT,), jnp.float32) * 0.1

    # c_block=512 exercises the channel-reduction grid axis: grid = (2, 4).
    fwd = jax.jit(functools.partial(gp_forward, c_block=512))
    out = jax.block_until_ready(fwd(x, w, b))
    assert out.shape == (N, C_OUT, H // POOL_H, W // POOL_W), out.shape

    # Pure-JAX reference: AvgPool2d((8, 10)) then 1x1 conv + bias.
    Ho, Wo = H // POOL_H, W // POOL_W
    pooled_ref = x[:, :, :Ho * POOL_H, :Wo * POOL_W]
    pooled_ref = pooled_ref.reshape(N, C_IN, Ho, POOL_H, Wo, POOL_W).mean(
        axis=(3, 5))
    ref = jnp.einsum("nchw,oc->nohw", pooled_ref, w) + b.reshape(1, C_OUT, 1, 1)
    max_err = float(jnp.max(jnp.abs(out - ref)))
    assert jnp.allclose(out, ref, rtol=1e-2, atol=1e-2), max_err

    print("KERNEL_OK")
</pallas_src>

<mosaic_0001>
module attributes {stable_mosaic.version = 11 : i64} {
  func.func @_gp_kernel(%arg0: i32, %arg1: i32, %arg2: memref<1x512x320xf32, #tpu.memory_space<vmem>>, %arg3: memref<320x4xf32, #tpu.memory_space<vmem>>, %arg4: memref<27x512xf32, #tpu.memory_space<vmem>>, %arg5: memref<27x1xf32, #tpu.memory_space<vmem>>, %arg6: memref<1x27x4xf32, #tpu.memory_space<vmem>>, %arg7: memref<27x320xf32, #tpu.memory_space<vmem>>) attributes {dimension_semantics = [#tpu.dimension_semantics<parallel>, #tpu.dimension_semantics<arbitrary>], iteration_bounds = array<i64: 2, 4>, scalar_prefetch = 0 : i64, scratch_operands = 1 : i64, tpu.core_type = #tpu.core_type<tc>, window_params = [{transform_indices = @transform_0, window_bounds = array<i64: 1, 512, 320>}, {pipeline_mode = #tpu.pipeline_mode<synchronous>, transform_indices = @transform_1, window_bounds = array<i64: 320, 4>}, {transform_indices = @transform_2, window_bounds = array<i64: 27, 512>}, {pipeline_mode = #tpu.pipeline_mode<synchronous>, transform_indices = @transform_3, window_bounds = array<i64: 27, 1>}, {transform_indices = @transform_4, window_bounds = array<i64: 1, 27, 4>}]} {
    %c0_i32 = arith.constant 0 : i32
    %0 = arith.cmpi eq, %arg1, %c0_i32 : i32
    %1 = arith.extui %0 : i1 to i32
    %c0_i32_0 = arith.constant 0 : i32
    %2 = arith.cmpi ne, %1, %c0_i32_0 : i32
    scf.if %2 {
      %cst_10 = arith.constant 0.000000e+00 : f32
      %13 = vector.broadcast %cst_10 : f32 to vector<27x320xf32>
      %c0_11 = arith.constant 0 : index
      %c0_12 = arith.constant 0 : index
      %14 = vector.load %arg7[%c0_11, %c0_12] : memref<27x320xf32, #tpu.memory_space<vmem>>, vector<27x320xf32>
      tpu.vector_store %arg7[%c0_11, %c0_12], %13 {strides = array<i32>} : memref<27x320xf32, #tpu.memory_space<vmem>>, vector<27x320xf32>,
    } else {
    }
    %c0 = arith.constant 0 : index
    %c0_1 = arith.constant 0 : index
    %3 = vector.load %arg7[%c0, %c0_1] : memref<27x320xf32, #tpu.memory_space<vmem>>, vector<27x320xf32>
    %c0_2 = arith.constant 0 : index
    %c0_3 = arith.constant 0 : index
    %4 = vector.load %arg4[%c0_2, %c0_3] : memref<27x512xf32, #tpu.memory_space<vmem>>, vector<27x512xf32>
    %c0_4 = arith.constant 0 : index
    %c0_5 = arith.constant 0 : index
    %c0_6 = arith.constant 0 : index
    %5 = vector.load %arg2[%c0_4, %c0_5, %c0_6] : memref<1x512x320xf32, #tpu.memory_space<vmem>>, vector<1x512x320xf32>
    %6 = vector.shape_cast %5 : vector<1x512x320xf32> to vector<512x320xf32>
    %cst = arith.constant dense<0.000000e+00> : vector<27x320xf32>
    %7 = tpu.matmul %4, %6, %cst {dimension_numbers = #tpu.dot_dimension_numbers<[1], [0], [0], [1], [0, 0, 1, 1], [], []>} : vector<27x512xf32>, vector<512x320xf32>, vector<27x320xf32> -> vector<27x320xf32>
    %8 = arith.addf %3, %7 : vector<27x320xf32>
    %c0_7 = arith.constant 0 : index
    %c0_8 = arith.constant 0 : index
    %9 = vector.load %arg7[%c0_7, %c0_8] : memref<27x320xf32, #tpu.memory_space<vmem>>, vector<27x320xf32>
    tpu.vector_store %arg7[%c0_7, %c0_8], %8 {strides = array<i32>} : memref<27x320xf32, #tpu.memory_space<vmem>>, vector<27x320xf32>,
    %c3_i32 = arith.constant 3 : i32
    %10 = arith.cmpi eq, %arg1, %c3_i32 : i32
    %11 = arith.extui %10 : i1 to i32
    %c0_i32_9 = arith.constant 0 : i32
    %12 = arith.cmpi ne, %11, %c0_i32_9 : i32
    scf.if %12 {
      %c0_10 = arith.constant 0 : index
      %c0_11 = arith.constant 0 : index
      %13 = vector.load %arg7[%c0_10, %c0_11] : memref<27x320xf32, #tpu.memory_space<vmem>>, vector<27x320xf32>
      %c0_12 = arith.constant 0 : index
      %c0_13 = arith.constant 0 : index
      %14 = vector.load %arg3[%c0_12, %c0_13] : memref<320x4xf32, #tpu.memory_space<vmem>>, vector<320x4xf32>
      %cst_14 = arith.constant dense<0.000000e+00> : vector<27x4xf32>
      %15 = tpu.matmul %13, %14, %cst_14 {dimension_numbers = #tpu.dot_dimension_numbers<[1], [0], [0], [1], [0, 0, 1, 1], [], []>} : vector<27x320xf32>, vector<320x4xf32>, vector<27x4xf32> -> vector<27x4xf32>
      %cst_15 = arith.constant 1.250000e-02 : f32
      %16 = vector.broadcast %cst_15 : f32 to vector<27x4xf32>
      %17 = arith.mulf %15, %16 : vector<27x4xf32>
      %c0_16 = arith.constant 0 : index
      %c0_17 = arith.constant 0 : index
      %18 = vector.load %arg5[%c0_16, %c0_17] : memref<27x1xf32, #tpu.memory_space<vmem>>, vector<27x1xf32>
      %19 = vector.broadcast %18 : vector<27x1xf32> to vector<27x4xf32>
      %20 = arith.addf %17, %19 : vector<27x4xf32>
      %c0_18 = arith.constant 0 : index
      %c0_19 = arith.constant 0 : index
      %c0_20 = arith.constant 0 : index
      %21 = vector.load %arg6[%c0_18, %c0_19, %c0_20] : memref<1x27x4xf32, #tpu.memory_space<vmem>>, vector<1x27x4xf32>
      %22 = vector.shape_cast %21 : vector<1x27x4xf32> to vector<27x4xf32>
      %23 = vector.shape_cast %20 : vector<27x4xf32> to vector<1x27x4xf32>
      tpu.vector_store %arg6[%c0_18, %c0_19, %c0_20], %23 {strides = array<i32>} : memref<1x27x4xf32, #tpu.memory_space<vmem>>, vector<1x27x4xf32>,
    } else {
    }
    return
  }
  func.func @transform_0(%arg0: i32, %arg1: i32) -> (i32, i32, i32) {
    %c0_i32 = arith.constant 0 : i32
    %c0_i32_0 = arith.constant 0 : i32
    return %arg0, %arg1, %c0_i32 : i32, i32, i32
  }
  func.func @transform_1(%arg0: i32, %arg1: i32) -> (i32, i32) {
    %c0_i32 = arith.constant 0 : i32
    %c0_i32_0 = arith.constant 0 : i32
    %c0_i32_1 = arith.constant 0 : i32
    return %c0_i32, %c0_i32_0 : i32, i32
  }
  func.func @transform_2(%arg0: i32, %arg1: i32) -> (i32, i32) {
    %c0_i32 = arith.constant 0 : i32
    %c0_i32_0 = arith.constant 0 : i32
    return %c0_i32, %arg1 : i32, i32
  }
  func.func @transform_3(%arg0: i32, %arg1: i32) -> (i32, i32) {
    %c0_i32 = arith.constant 0 : i32
    %c0_i32_0 = arith.constant 0 : i32
    %c0_i32_1 = arith.constant 0 : i32
    return %c0_i32, %c0_i32_0 : i32, i32
  }
  func.func @transform_4(%arg0: i32, %arg1: i32) -> (i32, i32, i32) {
    %c0_i32 = arith.constant 0 : i32
    %c0_i32_0 = arith.constant 0 : i32
    %c0_i32_1 = arith.constant 0 : i32
    return %arg0, %c0_i32, %c0_i32_0 : i32, i32, i32
  }
}

</mosaic_0001>

<bundles_post_ra>
// kernel: gp_forward.1
= control target key start
LH: loop header
LB: loop body
LE: loop exit
PB: predicated region body
PF: predicated region fallthrough
CT: control target
= control target key end

     0   :  { %s1615_s15 = smov 0   ;;  %s1617_s16 = smov 0   ;;  %s2133_s0 = inlined_call_operand.vmem [shape: f32[2,2048,320], index: 0, kind: input, shape index: {}]   ;;  %s2134_s1 = inlined_call_operand.vmem [shape: f32[320,4], index: 1, kind: input, shape index: {}]   ;;  %s2135_s2 = inlined_call_operand.vmem [shape: f32[27,2048], index: 2, kind: input, shape index: {}]   ;;  %s2136_s3 = inlined_call_operand.vmem [shape: f32[27,1], index: 3, kind: input, shape index: {}]   ;;  %s2137_s4 = inlined_call_operand.vmem [shape: f32[2,27,4], index: 4, kind: output, shape index: {}]  }
   0x1   :  { %s1619_s17 = smov 0   ;;  %s1621_s18 = smov 0  }
   0x2   :  { %s1623_s19 = smov 0   ;;  %s1625_s20 = smov 0  }
   0x3   :  { %s1627_s21 = smov 0  }
   0x4 LB: > { %s23_s22 = sadd.s32 1, %s1578_s19  ;;  %s26_s23 = sadd.s32 1, %s1582_s20  ;;  %s1586_s21 = sphi %s1627_s21, %s14_s21   ;;  %s1582_s20 = sphi %s1625_s20, %s2143_s20   ;;  %s1578_s19 = sphi %s1623_s19, %s2142_s19   ;;  %s1574_s18 = sphi %s1621_s18, %s2141_s18   ;;  %s1570_s17 = sphi %s1619_s17, %s2140_s17   ;;  %s1566_s16 = sphi %s1617_s16, %s2139_s16   ;;  %s1562_s15 = sphi %s1615_s15, %s2138_s15  }
   0x5   : > { %p24_p0 = scmp.ge.s32.totalorder %s23_s22, 4  ;;  %s82_s24 = sadd.s32 1, %s1566_s16 }
   0x6   : > { %p89_p1 = scmp.ne.s32.totalorder %s1566_s16, %s1562_s15  ;;  %p90_p2 = scmp.eq.s32.totalorder %s1586_s21, 0 }
   0x7   : > { %s2145_s22 = smov (%p24_p0, %s23_s22), 0  ;;  %s2147_s23 = smov (!%p24_p0, %s26_s23), %s1582_s20 }
   0x8   : > { %s79_s25 = ssub.s32 %s1578_s19, %s2145_s22  ;;  %p91_p3 = por %p90_p2, %p89_p1 }
   0x9   : > { %p28_p4 = scmp.ge.s32.totalorder %s2147_s23, 2  ;;  %p80_p5 = scmp.eq.s32.totalorder %s79_s25, 0 }
   0xa   : > { %p1284_p6 = scmp.ge.s32.totalorder %s1586_s21, 8 }
   0xb   : > { %s2149_s23 = smov (%p28_p4, %s2147_s23), 0 }
   0xc   : > { %s1664_s26 = scalar_select %p80_p5, %s1566_s16, %s82_s24  }
   0xd   : > { %168 = sbr.rel (%p1284_p6) target bundleno = 30 (0x1e), region = 24 }
  0x12   : > { %185 = sbr.rel (!%p91_p3) target bundleno = 30 (0x1e), region = 32  ;;  %s187_s27 = sand.u32 (%p91_p3), 1, %s1566_s16  }
  0x13   : > { %s1302_s28 = sshll.u32 (%p91_p3), %s1578_s19, 5  ;;  %s1285_s29 = sshll.u32 (%p91_p3), %s187_s27, 7 }
  0x14   : > { %s1672_s6 = scalar_lea.vmem (%p91_p3), %s2135_s2, %s1302_s28  ;;  %s189_s7 = scalar_lea.vmem (%p91_p3), [#allocation3], %s1285_s29 }
  0x15   : > { %v205_v0 = vld [vmem:[%s1672_s6] sm:$0xff] (%p91_p3)  ;;  %v207_v1 = vld [vmem:[%s1672_s6 + $0x8] sm:$0xff] (%p91_p3)  ;;  %v209_v2 = vld [vmem:[%s1672_s6 + $0x10] sm:$0xff] (%p91_p3) }
  0x16   : > { %206 = vst [vmem:[%s189_s7] sm:$0xff] (%p91_p3), %v205_v0  ;;  %208 = vst [vmem:[%s189_s7 + $0x8] sm:$0xff] (%p91_p3), %v207_v1  ;;  %v211_v3 = vld [vmem:[%s1672_s6 + $0x18] sm:$0xff] (%p91_p3)  ;;  %v213_v4 = vld [vmem:[%s1672_s6 + $0x80] sm:$0xff] (%p91_p3) }
  0x17   : > { %210 = vst [vmem:[%s189_s7 + $0x10] sm:$0xff] %v209_v2  ;;  %v215_v5 = vld [vmem:[%s1672_s6 + $0x88] sm:$0xff]  ;;  %212 = vst [vmem:[%s189_s7 + $0x18] sm:$0xff] %v211_v3  ;;  %v217_v6 = vld [vmem:[%s1672_s6 + $0x90] sm:$0xff] }
  0x18   : > { %214 = vst [vmem:[%s189_s7 + $0x20] sm:$0xff] %v213_v4  ;;  %216 = vst [vmem:[%s189_s7 + $0x28] sm:$0xff] %v215_v5  ;;  %v219_v7 = vld [vmem:[%s1672_s6 + $0x98] sm:$0xff]  ;;  %v221_v8 = vld [vmem:[%s1672_s6 + $0x100] sm:$0xff] }
  0x19   : > { %218 = vst [vmem:[%s189_s7 + $0x30] sm:$0xff] %v217_v6  ;;  %220 = vst [vmem:[%s189_s7 + $0x38] sm:$0xff] %v219_v7  ;;  %v223_v9 = vld [vmem:[%s1672_s6 + $0x108] sm:$0xff]  ;;  %v225_v10 = vld [vmem:[%s1672_s6 + $0x110] sm:$0xff] }
  0x1a   : > { %222 = vst [vmem:[%s189_s7 + $0x40] sm:$0xff] %v221_v8  ;;  %v227_v11 = vld [vmem:[%s1672_s6 + $0x118] sm:$0xff]  ;;  %224 = vst [vmem:[%s189_s7 + $0x48] sm:$0xff] %v223_v9  ;;  %v229_v12 = vld [vmem:[%s1672_s6 + $0x180] sm:$0xff] }
  0x1b   : > { %226 = vst [vmem:[%s189_s7 + $0x50] sm:$0xff] %v225_v10  ;;  %228 = vst [vmem:[%s189_s7 + $0x58] sm:$0xff] %v227_v11  ;;  %v231_v13 = vld [vmem:[%s1672_s6 + $0x188] sm:$0xff]  ;;  %v233_v14 = vld [vmem:[%s1672_s6 + $0x190] sm:$0xff] }
  0x1c   : > { %230 = vst [vmem:[%s189_s7 + $0x60] sm:$0xff] %v229_v12  ;;  %232 = vst [vmem:[%s189_s7 + $0x68] sm:$0xff] %v231_v13  ;;  %v235_v15 = vld [vmem:[%s1672_s6 + $0x198] sm:$0xff] }
  0x1d   : > { %234 = vst [vmem:[%s189_s7 + $0x70] sm:$0xff] %v233_v14  ;;  %236 = vst [vmem:[%s189_s7 + $0x78] sm:$0xff] %v235_v15 }
  0x1e PF: > { %p1288_p7 = scmp.ge.s32.totalorder %s1586_s21, 1  ;;  %p241_p8 = scmp.lt.s32.totalorder %s1586_s21, 9 }
  0x20   : > { %p242_p9 = pnand %p1288_p7, %p241_p8 }
  0x21   : > { %s248_s8 = sand.u32 (!%p242_p9), 1, %s1562_s15   ;;  %s1290_s9 = sshll.u32 (!%p242_p9), %s1570_s17, 6 }
  0x22   : > { %245 = sbr.rel (%p242_p9) target bundleno = 625 (0x271), region = 55  ;;  %s1289_s10 = sshll.u32 (!%p242_p9), %s248_s8, 7 }
  0x23   : > { %p284_p10 = scmp.lt.s32.totalorder (!%p242_p9), %s1574_s18, 1  ;;  %p286_p11 = scmp.lt.s32.totalorder (!%p242_p9), %s1290_s9, 255 }
  0x24   : > { %s1706_s5 = scalar_lea.vmem (!%p242_p9), [#allocation3], %s1289_s10  ;;  %p1294_p12 = scmp.ne.s32.totalorder (!%p242_p9), %s1570_s17, 0 }
  0x27   : > { %s2151_s18 = smov (!%p284_p10, %s1574_s18), 1  ;;  %s2153_s9 = smov (!%p286_p11, %s1290_s9), 255 }
  0x28   : > { %s1471_s11 = smul.u32 768, %s2151_s18  ;;  %s1303_s12 = sshll.u32 %s2151_s18, 5 }
  0x29   : > { %s1470_s13 = smul.u32 3, %s2153_s9  ;;  %s1699_s25 = scalar_lea.vmem %s2137_s4, %s1303_s12 }
  0x2a   : > { %303 = sbr.rel (%p1294_p12) target bundleno = 55 (0x37), region = 63 }
  0x2b   : > { %s290_s27 = sadd.s32 %s1471_s11, %s1470_s13 }
  0x2c   : > { %s1291_s28 = sshll.u32 %s290_s27, 3 }
  0x2d   : > { %s1704_s15 = scalar_lea.vmem %s2133_s0, %s1291_s28 }
  0x2f   : > { %vm306_vm0 = vcmask 523264   ;;  %vm316_vm1 = vcmask 518144   ;;  %v1588_v16 = vmov 0.0  }
  0x30   : > { %304 = vst [vmem:[#allocation2] sm:$0xff] %v1588_v16  ;;  %305 = vst [vmem:[#allocation2 + $0x8] sm:$0xff] %v1588_v16 }
  0x31   : > { %308 = vst [vmem:[#allocation2 + $0x18] sm:$0xff] %v1588_v16  ;;  %309 = vst [vmem:[#allocation2 + $0x20] sm:$0xff] %v1588_v16 }
  0x32   : > { %311 = vst [vmem:[#allocation2 + $0x30] sm:$0xff] %v1588_v16  ;;  %312 = vst [vmem:[#allocation2 + $0x38] sm:$0xff] %v1588_v16 }
  0x33   : > { %314 = vst [vmem:[#allocation2 + $0x48] sm:$0x7] %v1588_v16  ;;  %315 = vst [vmem:[#allocation2 + $0x50] sm:$0x7] %v1588_v16 }
  0x34   : > { %307 = vst.msk [vmem:[#allocation2 + $0x10] sm:$0xff] %vm306_vm0, %v1588_v16  ;;  %310 = vst.msk [vmem:[#allocation2 + $0x28] sm:$0xff] %vm306_vm0, %v1588_v16 }
  0x35   : > { %313 = vst.msk [vmem:[#allocation2 + $0x40] sm:$0xff] %vm306_vm0, %v1588_v16 }
  0x36   : > { %317 = vst.msk [vmem:[#allocation2 + $0x58] sm:$0x7] %vm316_vm1, %v1588_v16 }
  0x37 PF: > { %v392_v17 = vld [vmem:[%s1704_s15 + $0x170] sm:$0xff]  ;;  %v391_v19 = vld [vmem:[%s1704_s15 + $0x168] sm:$0xff]  ;;  %v389_v21 = vld [vmem:[%s1704_s15 + $0x158] sm:$0xff]  ;;  %vm900_vm2 = vcmask 523264   ;;  %vm910_vm3 = vcmask 518144   ;;  %p1295_p13 = scmp.ne.s32.totalorder %s1570_s17, 3 }
  0x38   : > { %v488_v18 = vld [vmem:[%s1704_s15 + $0x470] sm:$0xff]  ;;  %538 = vmatprep.subr.mxu0 %v392_v17  ;;  %v487_v20 = vld [vmem:[%s1704_s15 + $0x468] sm:$0xff]  ;;  %v485_v22 = vld [vmem:[%s1704_s15 + $0x458] sm:$0xff] }
  0x39   : > { %627 = vmatprep.subr.mxu1 %v488_v18  ;;  %539 = vmatpush1.msra.mxu0 %v391_v19  ;;  %v388_v23 = vld [vmem:[%s1704_s15 + $0x150] sm:$0xff]  ;;  %v386_v25 = vld [vmem:[%s1704_s15 + $0x140] sm:$0xff]  ;;  %v385_v27 = vld [vmem:[%s1704_s15 + $0x138] sm:$0xff] }
  0x3a   : > { %628 = vmatpush1.msra.mxu1 %v487_v20  ;;  %v484_v24 = vld [vmem:[%s1704_s15 + $0x450] sm:$0xff]  ;;  %540 = vmatprep.subr.mxu0 %v389_v21  ;;  %v482_v26 = vld [vmem:[%s1704_s15 + $0x440] sm:$0xff]  ;;  %v481_v28 = vld [vmem:[%s1704_s15 + $0x438] sm:$0xff] }
  0x3b   : > { %629 = vmatprep.subr.mxu1 %v485_v22  ;;  %541 = vmatpush1.msra.mxu0 %v388_v23  ;;  %v383_v29 = vld [vmem:[%s1704_s15 + $0x128] sm:$0xff]  ;;  %v382_v31 = vld [vmem:[%s1704_s15 + $0x120] sm:$0xff]  ;;  %v380_v33 = vld [vmem:[%s1704_s15 + $0x110] sm:$0xff] }
  0x3c   : > { %630 = vmatpush1.msra.mxu1 %v484_v24  ;;  %v479_v30 = vld [vmem:[%s1704_s15 + $0x428] sm:$0xff]  ;;  %542 = vmatprep.subr.mxu0 %v386_v25  ;;  %v478_v32 = vld [vmem:[%s1704_s15 + $0x420] sm:$0xff]  ;;  %v476_v34 = vld [vmem:[%s1704_s15 + $0x410] sm:$0xff] }
  0x3d   : > { %631 = vmatprep.subr.mxu1 %v482_v26  ;;  %543 = vmatpush1.msra.mxu0 %v385_v27  ;;  %v379_v35 = vld [vmem:[%s1704_s15 + $0x108] sm:$0xff]  ;;  %v377_v37 = vld [vmem:[%s1704_s15 + $0xf8] sm:$0xff]  ;;  %v376_v39 = vld [vmem:[%s1704_s15 + $0xf0] sm:$0xff] }
  0x3e   : > { %632 = vmatpush1.msra.mxu1 %v481_v28  ;;  %544 = vmatprep.subr.mxu0 %v383_v29  ;;  %v475_v36 = vld [vmem:[%s1704_s15 + $0x408] sm:$0xff]  ;;  %v473_v38 = vld [vmem:[%s1704_s15 + $0x3f8] sm:$0xff]  ;;  %v472_v40 = vld [vmem:[%s1704_s15 + $0x3f0] sm:$0xff] }
  0x3f   : > { %633 = vmatprep.subr.mxu1 %v479_v30  ;;  %545 = vmatpush1.msra.mxu0 %v382_v31  ;;  %v374_v41 = vld [vmem:[%s1704_s15 + $0xe0] sm:$0xff]  ;;  %v373_v43 = vld [vmem:[%s1704_s15 + $0xd8] sm:$0xff]  ;;  %v371_v45 = vld [vmem:[%s1704_s15 + $0xc8] sm:$0xff] }
  0x40   : > { %634 = vmatpush1.msra.mxu1 %v478_v32  ;;  %546 = vmatprep.subr.mxu0 %v380_v33  ;;  %v470_v42 = vld [vmem:[%s1704_s15 + $0x3e0] sm:$0xff]  ;;  %v469_v44 = vld [vmem:[%s1704_s15 + $0x3d8] sm:$0xff]  ;;  %v467_v46 = vld [vmem:[%s1704_s15 + $0x3c8] sm:$0xff] }
  0x41   : > { %635 = vmatprep.subr.mxu1 %v476_v34  ;;  %547 = vmatpush1.msra.mxu0 %v379_v35  ;;  %v370_v47 = vld [vmem:[%s1704_s15 + $0xc0] sm:$0xff]  ;;  %v368_v49 = vld [vmem:[%s1704_s15 + $0xb0] sm:$0xff]  ;;  %v367_v51 = vld [vmem:[%s1704_s15 + $0xa8] sm:$0xff] }
  0x42   : > { %636 = vmatpush1.msra.mxu1 %v475_v36  ;;  %548 = vmatprep.subr.mxu0 %v377_v37  ;;  %v466_v48 = vld [vmem:[%s1704_s15 + $0x3c0] sm:$0xff]  ;;  %v464_v50 = vld [vmem:[%s1704_s15 + $0x3b0] sm:$0xff]  ;;  %v463_v52 = vld [vmem:[%s1704_s15 + $0x3a8] sm:$0xff] }
  0x43   : > { %637 = vmatprep.subr.mxu1 %v473_v38  ;;  %549 = vmatpush1.msra.mxu0 %v376_v39  ;;  %v365_v53 = vld [vmem:[%s1704_s15 + $0x98] sm:$0xff]  ;;  %v364_v55 = vld [vmem:[%s1704_s15 + $0x90] sm:$0xff]  ;;  %v362_v57 = vld [vmem:[%s1704_s15 + $0x80] sm:$0xff] }
  0x44   : > { %638 = vmatpush1.msra.mxu1 %v472_v40  ;;  %550 = vmatprep.subr.mxu0 %v374_v41  ;;  %v461_v54 = vld [vmem:[%s1704_s15 + $0x398] sm:$0xff]  ;;  %v460_v56 = vld [vmem:[%s1704_s15 + $0x390] sm:$0xff]  ;;  %v458_v58 = vld [vmem:[%s1704_s15 + $0x380] sm:$0xff] }
  0x45   : > { %639 = vmatprep.subr.mxu1 %v470_v42  ;;  %551 = vmatpush1.msra.mxu0 %v373_v43  ;;  %v361_v59 = vld [vmem:[%s1704_s15 + $0x78] sm:$0xff]  ;;  %v359_v61 = vld [vmem:[%s1704_s15 + $0x68] sm:$0xff]  ;;  %v358_v63 = vld [vmem:[%s1704_s15 + $0x60] sm:$0xff] }
  0x46   : > { %640 = vmatpush1.msra.mxu1 %v469_v44  ;;  %552 = vmatprep.subr.mxu0 %v371_v45  ;;  %v457_v60 = vld [vmem:[%s1704_s15 + $0x378] sm:$0xff]  ;;  %v455_v62 = vld [vmem:[%s1704_s15 + $0x368] sm:$0xff]  ;;  %v454_v0 = vld [vmem:[%s1704_s15 + $0x360] sm:$0xff] }
  0x47   : > { %641 = vmatprep.subr.mxu1 %v467_v46  ;;  %553 = vmatpush1.msra.mxu0 %v370_v47  ;;  %v356_v1 = vld [vmem:[%s1704_s15 + $0x50] sm:$0xff]  ;;  %v355_v3 = vld [vmem:[%s1704_s15 + $0x48] sm:$0xff]  ;;  %v353_v5 = vld [vmem:[%s1704_s15 + $0x38] sm:$0xff] }
  0x48   : > { %642 = vmatpush1.msra.mxu1 %v466_v48  ;;  %554 = vmatprep.subr.mxu0 %v368_v49  ;;  %v452_v2 = vld [vmem:[%s1704_s15 + $0x350] sm:$0xff]  ;;  %v451_v4 = vld [vmem:[%s1704_s15 + $0x348] sm:$0xff]  ;;  %v449_v6 = vld [vmem:[%s1704_s15 + $0x338] sm:$0xff] }
  0x49   : > { %643 = vmatprep.subr.mxu1 %v464_v50  ;;  %555 = vmatpush1.msra.mxu0 %v367_v51  ;;  %v352_v7 = vld [vmem:[%s1704_s15 + $0x30] sm:$0xff]  ;;  %v350_v9 = vld [vmem:[%s1704_s15 + $0x20] sm:$0xff]  ;;  %v349_v11 = vld [vmem:[%s1704_s15 + $0x18] sm:$0xff] }
  0x4a   : > { %644 = vmatpush1.msra.mxu1 %v463_v52  ;;  %556 = vmatprep.subr.mxu0 %v365_v53  ;;  %v448_v8 = vld [vmem:[%s1704_s15 + $0x330] sm:$0xff]  ;;  %v446_v10 = vld [vmem:[%s1704_s15 + $0x320] sm:$0xff]  ;;  %v445_v12 = vld [vmem:[%s1704_s15 + $0x318] sm:$0xff] }
  0x4b   : > { %645 = vmatprep.subr.mxu1 %v461_v54  ;;  %557 = vmatpush1.msra.mxu0 %v364_v55  ;;  %v347_v13 = vld [vmem:[%s1704_s15 + $0x8] sm:$0xff]  ;;  %v346_v15 = vld [vmem:[%s1704_s15] sm:$0xff]  ;;  %v440_v17 = vld [vmem:[%s1704_s15 + $0x2f0] sm:$0xff] }
  0x4c   : > { %646 = vmatpush1.msra.mxu1 %v460_v56  ;;  %558 = vmatprep.subr.mxu0 %v362_v57  ;;  %v443_v14 = vld [vmem:[%s1704_s15 + $0x308] sm:$0xff]  ;;  %v442_v16 = vld [vmem:[%s1704_s15 + $0x300] sm:$0xff]  ;;  %v536_v18 = vld [vmem:[%s1704_s15 + $0x5f0] sm:$0xff] }
  0x4d   : > { %647 = vmatprep.subr.mxu1 %v458_v58  ;;  %559 = vmatpush1.msra.mxu0 %v361_v59  ;;  %v439_v19 = vld [vmem:[%s1704_s15 + $0x2e8] sm:$0xff]  ;;  %v437_v21 = vld [vmem:[%s1704_s15 + $0x2d8] sm:$0xff]  ;;  %v436_v23 = vld [vmem:[%s1704_s15 + $0x2d0] sm:$0xff] }
  0x4e   : > { %648 = vmatpush1.msra.mxu1 %v457_v60  ;;  %560 = vmatprep.subr.mxu0 %v359_v61  ;;  %v535_v20 = vld [vmem:[%s1704_s15 + $0x5e8] sm:$0xff]  ;;  %v533_v22 = vld [vmem:[%s1704_s15 + $0x5d8] sm:$0xff]  ;;  %v532_v24 = vld [vmem:[%s1704_s15 + $0x5d0] sm:$0xff] }
  0x4f   : > { %649 = vmatprep.subr.mxu1 %v455_v62  ;;  %561 = vmatpush1.msra.mxu0 %v358_v63  ;;  %v434_v25 = vld [vmem:[%s1704_s15 + $0x2c0] sm:$0xff]  ;;  %v433_v27 = vld [vmem:[%s1704_s15 + $0x2b8] sm:$0xff]  ;;  %v431_v29 = vld [vmem:[%s1704_s15 + $0x2a8] sm:$0xff] }
  0x50   : > { %650 = vmatpush1.msra.mxu1 %v454_v0  ;;  %562 = vmatprep.subr.mxu0 %v356_v1  ;;  %v530_v26 = vld [vmem:[%s1704_s15 + $0x5c0] sm:$0xff]  ;;  %v529_v28 = vld [vmem:[%s1704_s15 + $0x5b8] sm:$0xff]  ;;  %v527_v30 = vld [vmem:[%s1704_s15 + $0x5a8] sm:$0xff] }
  0x51   : > { %651 = vmatprep.subr.mxu1 %v452_v2  ;;  %563 = vmatpush1.msra.mxu0 %v355_v3  ;;  %v430_v31 = vld [vmem:[%s1704_s15 + $0x2a0] sm:$0xff]  ;;  %v428_v33 = vld [vmem:[%s1704_s15 + $0x290] sm:$0xff]  ;;  %v427_v35 = vld [vmem:[%s1704_s15 + $0x288] sm:$0xff] }
  0x52   : > { %652 = vmatpush1.msra.mxu1 %v451_v4  ;;  %564 = vmatprep.subr.mxu0 %v353_v5  ;;  %v526_v32 = vld [vmem:[%s1704_s15 + $0x5a0] sm:$0xff]  ;;  %v524_v34 = vld [vmem:[%s1704_s15 + $0x590] sm:$0xff]  ;;  %v523_v36 = vld [vmem:[%s1704_s15 + $0x588] sm:$0xff] }
  0x53   : > { %653 = vmatprep.subr.mxu1 %v449_v6  ;;  %565 = vmatpush1.msra.mxu0 %v352_v7  ;;  %v425_v37 = vld [vmem:[%s1704_s15 + $0x278] sm:$0xff]  ;;  %v424_v39 = vld [vmem:[%s1704_s15 + $0x270] sm:$0xff]  ;;  %v422_v41 = vld [vmem:[%s1704_s15 + $0x260] sm:$0xff] }
  0x54   : > { %654 = vmatpush1.msra.mxu1 %v448_v8  ;;  %566 = vmatprep.subr.mxu0 %v350_v9  ;;  %v521_v38 = vld [vmem:[%s1704_s15 + $0x578] sm:$0xff]  ;;  %v520_v40 = vld [vmem:[%s1704_s15 + $0x570] sm:$0xff]  ;;  %v518_v42 = vld [vmem:[%s1704_s15 + $0x560] sm:$0xff] }
  0x55   : > { %655 = vmatprep.subr.mxu1 %v446_v10  ;;  %567 = vmatpush1.msra.mxu0 %v349_v11  ;;  %v421_v43 = vld [vmem:[%s1704_s15 + $0x258] sm:$0xff]  ;;  %v419_v45 = vld [vmem:[%s1704_s15 + $0x248] sm:$0xff]  ;;  %v418_v47 = vld [vmem:[%s1704_s15 + $0x240] sm:$0xff] }
  0x56   : > { %656 = vmatpush1.msra.mxu1 %v445_v12  ;;  %568 = vmatprep.subr.mxu0 %v347_v13  ;;  %v517_v44 = vld [vmem:[%s1704_s15 + $0x558] sm:$0xff]  ;;  %v515_v46 = vld [vmem:[%s1704_s15 + $0x548] sm:$0xff]  ;;  %v514_v48 = vld [vmem:[%s1704_s15 + $0x540] sm:$0xff] }
  0x57   : > { %657 = vmatprep.subr.mxu1 %v443_v14  ;;  %569 = vmatpush1.msra.mxu0 %v346_v15  ;;  %v416_v49 = vld [vmem:[%s1704_s15 + $0x230] sm:$0xff]  ;;  %v415_v51 = vld [vmem:[%s1704_s15 + $0x228] sm:$0xff]  ;;  %v413_v53 = vld [vmem:[%s1704_s15 + $0x218] sm:$0xff] }
  0x58   : > { %658 = vmatpush1.msra.mxu1 %v442_v16  ;;  %570 = vmatprep.subr.mxu0 %v440_v17  ;;  %v512_v50 = vld [vmem:[%s1704_s15 + $0x530] sm:$0xff]  ;;  %v511_v52 = vld [vmem:[%s1704_s15 + $0x528] sm:$0xff]  ;;  %v509_v54 = vld [vmem:[%s1704_s15 + $0x518] sm:$0xff] }
  0x59   : > { %659 = vmatprep.subr.mxu1 %v536_v18  ;;  %571 = vmatpush2.msra.mxu0 %v439_v19  ;;  %v412_v55 = vld [vmem:[%s1704_s15 + $0x210] sm:$0xff]  ;;  %v410_v57 = vld [vmem:[%s1704_s15 + $0x200] sm:$0xff]  ;;  %v409_v59 = vld [vmem:[%s1704_s15 + $0x1f8] sm:$0xff] }
  0x5a   : > { %660 = vmatpush2.msra.mxu1 %v535_v20  ;;  %572 = vmatprep.subr.mxu0 %v437_v21  ;;  %v508_v56 = vld [vmem:[%s1704_s15 + $0x510] sm:$0xff]  ;;  %v506_v58 = vld [vmem:[%s1704_s15 + $0x500] sm:$0xff]  ;;  %v505_v60 = vld [vmem:[%s1704_s15 + $0x4f8] sm:$0xff] }
  0x5b   : > { %661 = vmatprep.subr.mxu1 %v533_v22  ;;  %573 = vmatpush2.msra.mxu0 %v436_v23  ;;  %v407_v61 = vld [vmem:[%s1704_s15 + $0x1e8] sm:$0xff]  ;;  %v406_v63 = vld [vmem:[%s1704_s15 + $0x1e0] sm:$0xff]  ;;  %v404_v1 = vld [vmem:[%s1704_s15 + $0x1d0] sm:$0xff] }
  0x5c   : > { %662 = vmatpush2.msra.mxu1 %v532_v24  ;;  %574 = vmatprep.subr.mxu0 %v434_v25  ;;  %v503_v62 = vld [vmem:[%s1704_s15 + $0x4e8] sm:$0xff]  ;;  %v502_v0 = vld [vmem:[%s1704_s15 + $0x4e0] sm:$0xff]  ;;  %v500_v2 = vld [vmem:[%s1704_s15 + $0x4d0] sm:$0xff] }
  0x5d   : > { %663 = vmatprep.subr.mxu1 %v530_v26  ;;  %575 = vmatpush2.msra.mxu0 %v433_v27  ;;  %v403_v3 = vld [vmem:[%s1704_s15 + $0x1c8] sm:$0xff]  ;;  %v401_v5 = vld [vmem:[%s1704_s15 + $0x1b8] sm:$0xff]  ;;  %v400_v7 = vld [vmem:[%s1704_s15 + $0x1b0] sm:$0xff] }
  0x5e   : > { %664 = vmatpush2.msra.mxu1 %v529_v28  ;;  %576 = vmatprep.subr.mxu0 %v431_v29  ;;  %v499_v4 = vld [vmem:[%s1704_s15 + $0x4c8] sm:$0xff]  ;;  %v497_v6 = vld [vmem:[%s1704_s15 + $0x4b8] sm:$0xff]  ;;  %v496_v8 = vld [vmem:[%s1704_s15 + $0x4b0] sm:$0xff] }
  0x5f   : > { %665 = vmatprep.subr.mxu1 %v527_v30  ;;  %577 = vmatpush2.msra.mxu0 %v430_v31  ;;  %v398_v9 = vld [vmem:[%s1704_s15 + $0x1a0] sm:$0xff]  ;;  %v397_v11 = vld [vmem:[%s1704_s15 + $0x198] sm:$0xff]  ;;  %v395_v13 = vld [vmem:[%s1704_s15 + $0x188] sm:$0xff] }
  0x60   : > { %666 = vmatpush2.msra.mxu1 %v526_v32  ;;  %578 = vmatprep.subr.mxu0 %v428_v33  ;;  %v494_v10 = vld [vmem:[%s1704_s15 + $0x4a0] sm:$0xff]  ;;  %v493_v12 = vld [vmem:[%s1704_s15 + $0x498] sm:$0xff]  ;;  %v491_v14 = vld [vmem:[%s1704_s15 + $0x488] sm:$0xff] }
  0x61   : > { %667 = vmatprep.subr.mxu1 %v524_v34  ;;  %579 = vmatpush2.msra.mxu0 %v427_v35  ;;  %v394_v15 = vld [vmem:[%s1704_s15 + $0x180] sm:$0xff]  ;;  %v1837_v16 = vld [vmem:[%s1706_s5 + $0x8] sm:$0xff]  ;;  %v1841_v18 = vld [vmem:[%s1706_s5 + $0x18] sm:$0xff] }
  0x62   : > { %668 = vmatpush2.msra.mxu1 %v523_v36  ;;  %580 = vmatprep.subr.mxu0 %v425_v37  ;;  %v490_v17 = vld [vmem:[%s1704_s15 + $0x480] sm:$0xff]  ;;  %v1847_v20 = vld [vmem:[%s1706_s5 + $0x10] sm:$0xff]  ;;  %v441_v21 = vld [vmem:[%s1704_s15 + $0x2f8] sm:$0xff] }
  0x63   : > { %669 = vmatprep.subr.mxu1 %v521_v38  ;;  %581 = vmatpush2.msra.mxu0 %v424_v39  ;;  %v1844_v19 = vld [vmem:[%s1706_s5] sm:$0xff]  ;;  %v537_v22 = vld [vmem:[%s1704_s15 + $0x5f8] sm:$0xff]  ;;  %v435_v29 = vld [vmem:[%s1704_s15 + $0x2c8] sm:$0xff] }
  0x64   : > { %670 = vmatpush2.msra.mxu1 %v520_v40  ;;  %582 = vmatprep.subr.mxu0 %v422_v41  ;;  %v393_v23 = vld [vmem:[%s1704_s15 + $0x178] sm:$0xff]  ;;  %v438_v25 = vld [vmem:[%s1704_s15 + $0x2e0] sm:$0xff]  ;;  %v531_v30 = vld [vmem:[%s1704_s15 + $0x5c8] sm:$0xff] }
  0x65   : > { %671 = vmatprep.subr.mxu1 %v518_v42  ;;  %583 = vmatpush2.msra.mxu0 %v421_v43  ;;  %v489_v24 = vld [vmem:[%s1704_s15 + $0x478] sm:$0xff]  ;;  %v534_v26 = vld [vmem:[%s1704_s15 + $0x5e0] sm:$0xff]  ;;  %v387_v31 = vld [vmem:[%s1704_s15 + $0x148] sm:$0xff] }
  0x66   : > { %672 = vmatpush2.msra.mxu1 %v517_v44  ;;  %584 = vmatprep.subr.mxu0 %v419_v45  ;;  %v390_v27 = vld [vmem:[%s1704_s15 + $0x160] sm:$0xff]  ;;  %v483_v32 = vld [vmem:[%s1704_s15 + $0x448] sm:$0xff]  ;;  %v432_v33 = vld [vmem:[%s1704_s15 + $0x2b0] sm:$0xff] }
  0x67   : > { %673 = vmatprep.subr.mxu1 %v515_v46  ;;  %585 = vmatpush2.msra.mxu0 %v418_v47  ;;  %v486_v28 = vld [vmem:[%s1704_s15 + $0x460] sm:$0xff]  ;;  %v528_v34 = vld [vmem:[%s1704_s15 + $0x5b0] sm:$0xff]  ;;  %v429_v37 = vld [vmem:[%s1704_s15 + $0x298] sm:$0xff] }
  0x68   : > { %674 = vmatpush2.msra.mxu1 %v514_v48  ;;  %586 = vmatprep.subr.mxu0 %v416_v49  ;;  %v384_v35 = vld [vmem:[%s1704_s15 + $0x130] sm:$0xff]  ;;  %v525_v38 = vld [vmem:[%s1704_s15 + $0x598] sm:$0xff]  ;;  %v426_v41 = vld [vmem:[%s1704_s15 + $0x280] sm:$0xff] }
  0x69   : > { %675 = vmatprep.subr.mxu1 %v512_v50  ;;  %587 = vmatpush2.msra.mxu0 %v415_v51  ;;  %v480_v36 = vld [vmem:[%s1704_s15 + $0x430] sm:$0xff]  ;;  %v381_v39 = vld [vmem:[%s1704_s15 + $0x118] sm:$0xff]  ;;  %v522_v42 = vld [vmem:[%s1704_s15 + $0x580] sm:$0xff] }
  0x6a   : > { %676 = vmatpush2.msra.mxu1 %v511_v52  ;;  %588 = vmatprep.subr.mxu0 %v413_v53  ;;  %v477_v40 = vld [vmem:[%s1704_s15 + $0x418] sm:$0xff]  ;;  %v378_v43 = vld [vmem:[%s1704_s15 + $0x100] sm:$0xff]  ;;  %v423_v45 = vld [vmem:[%s1704_s15 + $0x268] sm:$0xff] }
  0x6b   : > { %677 = vmatprep.subr.mxu1 %v509_v54  ;;  %589 = vmatpush2.msra.mxu0 %v412_v55  ;;  %v474_v44 = vld [vmem:[%s1704_s15 + $0x400] sm:$0xff]  ;;  %v519_v46 = vld [vmem:[%s1704_s15 + $0x568] sm:$0xff]  ;;  %v420_v49 = vld [vmem:[%s1704_s15 + $0x250] sm:$0xff] }
  0x6c   : > { %678 = vmatpush2.msra.mxu1 %v508_v56  ;;  %590 = vmatprep.subr.mxu0 %v410_v57  ;;  %v375_v47 = vld [vmem:[%s1704_s15 + $0xe8] sm:$0xff]  ;;  %v516_v50 = vld [vmem:[%s1704_s15 + $0x550] sm:$0xff]  ;;  %v417_v53 = vld [vmem:[%s1704_s15 + $0x238] sm:$0xff] }
  0x6d   : > { %679 = vmatprep.subr.mxu1 %v506_v58  ;;  %591 = vmatpush2.msra.mxu0 %v409_v59  ;;  %v471_v48 = vld [vmem:[%s1704_s15 + $0x3e8] sm:$0xff]  ;;  %v372_v51 = vld [vmem:[%s1704_s15 + $0xd0] sm:$0xff]  ;;  %v513_v54 = vld [vmem:[%s1704_s15 + $0x538] sm:$0xff] }
  0x6e   : > { %680 = vmatpush2.msra.mxu1 %v505_v60  ;;  %592 = vmatprep.subr.mxu0 %v407_v61  ;;  %v468_v52 = vld [vmem:[%s1704_s15 + $0x3d0] sm:$0xff]  ;;  %v1888_v55 = vld [vmem:[%s1706_s5 + $0x28] sm:$0xff]  ;;  %v1891_v56 = vld [vmem:[%s1706_s5 + $0x38] sm:$0xff] }
  0x6f   : > { %681 = vmatprep.subr.mxu1 %v503_v62  ;;  %593 = vmatpush2.msra.mxu0 %v406_v63  ;;  %v369_v57 = vld [vmem:[%s1704_s15 + $0xb8] sm:$0xff]  ;;  %v1896_v59 = vld [vmem:[%s1706_s5 + $0x20] sm:$0xff]  ;;  %v1899_v60 = vld [vmem:[%s1706_s5 + $0x30] sm:$0xff] }
  0x70   : > { %682 = vmatpush2.msra.mxu1 %v502_v0  ;;  %594 = vmatprep.subr.mxu0 %v404_v1  ;;  %v465_v58 = vld [vmem:[%s1704_s15 + $0x3b8] sm:$0xff]  ;;  %v414_v61 = vld [vmem:[%s1704_s15 + $0x220] sm:$0xff]  ;;  %v411_v1 = vld [vmem:[%s1704_s15 + $0x208] sm:$0xff] }
  0x71   : > { %683 = vmatprep.subr.mxu1 %v500_v2  ;;  %595 = vmatpush2.msra.mxu0 %v403_v3  ;;  %v510_v62 = vld [vmem:[%s1704_s15 + $0x520] sm:$0xff]  ;;  %v507_v2 = vld [vmem:[%s1704_s15 + $0x508] sm:$0xff] }
  0x72   : > { %684 = vmatpush2.msra.mxu1 %v499_v4  ;;  %596 = vmatprep.subr.mxu0 %v401_v5  ;;  %v366_v63 = vld [vmem:[%s1704_s15 + $0xa0] sm:$0xff]  ;;  %v1912_v3 = vld [vmem:[%s1706_s5 + $0x48] sm:$0xff]  ;;  %v1915_v4 = vld [vmem:[%s1706_s5 + $0x58] sm:$0xff] }
  0x73   : > { %685 = vmatprep.subr.mxu1 %v497_v6  ;;  %597 = vmatpush2.msra.mxu0 %v400_v7  ;;  %v462_v0 = vld [vmem:[%s1704_s15 + $0x3a0] sm:$0xff]  ;;  %v363_v5 = vld [vmem:[%s1704_s15 + $0x88] sm:$0xff] }
  0x74   : > { %686 = vmatpush2.msra.mxu1 %v496_v8  ;;  %598 = vmatprep.subr.mxu0 %v398_v9  ;;  %v459_v6 = vld [vmem:[%s1704_s15 + $0x388] sm:$0xff]  ;;  %v1920_v7 = vld [vmem:[%s1706_s5 + $0x40] sm:$0xff]  ;;  %v1923_v8 = vld [vmem:[%s1706_s5 + $0x50] sm:$0xff] }
  0x75   : > { %687 = vmatprep.subr.mxu1 %v494_v10  ;;  %599 = vmatpush2.msra.mxu0 %v397_v11  ;;  %v408_v9 = vld [vmem:[%s1704_s15 + $0x1f0] sm:$0xff] }
  0x76   : > { %688 = vmatpush2.msra.mxu1 %v493_v12  ;;  %600 = vmatprep.subr.mxu0 %v395_v13  ;;  %v504_v10 = vld [vmem:[%s1704_s15 + $0x4f0] sm:$0xff]  ;;  %v405_v13 = vld [vmem:[%s1704_s15 + $0x1d8] sm:$0xff] }
  0x77   : > { %689 = vmatprep.subr.mxu1 %v491_v14  ;;  %601 = vmatpush2.msra.mxu0 %v394_v15  ;;  %v360_v11 = vld [vmem:[%s1704_s15 + $0x70] sm:$0xff]  ;;  %v501_v14 = vld [vmem:[%s1704_s15 + $0x4d8] sm:$0xff]  ;;  %v343_v15 = vld [vmem:[%s1706_s5 + $0x68] sm:$0x7] }
  0x78   : > { %602 = vmatprep.mubr.f32.mxu0 %v1837_v16  ;;  %690 = vmatpush2.msra.mxu1 %v490_v17  ;;  %v456_v12 = vld [vmem:[%s1704_s15 + $0x370] sm:$0xff]  ;;  %v345_v17 = vld [vmem:[%s1706_s5 + $0x78] sm:$0x7] }
  0x79   : > { %691 = vmatprep.mubr.f32.mxu1 %v1841_v18  ;;  %603 = vmatmul.mubr.f32.vlgmr.msra.gmra.mxu0 %v1844_v19 }
  0x7a   : > { %692 = vmatmul.mubr.f32.vlgmr.msra.gmra.mxu1 %v1847_v20  ;;  %1304 = vmatprep.subr.mxu0 %v441_v21  ;;  %v357_v21 = vld [vmem:[%s1704_s15 + $0x58] sm:$0xff] }
  0x7b   : > { %1348 = vmatprep.subr.mxu1 %v537_v22  ;;  %1305 = vmatpush3.msra.mxu0 %v393_v23  ;;  %v453_v22 = vld [vmem:[%s1704_s15 + $0x358] sm:$0xff]  ;;  %v342_v23 = vld [vmem:[%s1706_s5 + $0x60] sm:$0x7] }
  0x7c   : > { %1349 = vmatpush3.msra.mxu1 %v489_v24  ;;  %1306 = vmatprep.subr.mxu0 %v438_v25  ;;  %v344_v24 = vld [vmem:[%s1706_s5 + $0x70] sm:$0x7]  ;;  %v402_v25 = vld [vmem:[%s1704_s15 + $0x1c0] sm:$0xff] }
  0x7d   : > { %1350 = vmatprep.subr.mxu1 %v534_v26  ;;  %1307 = vmatpush3.msra.mxu0 %v390_v27  ;;  %v498_v26 = vld [vmem:[%s1704_s15 + $0x4c0] sm:$0xff] }
  0x7e   : > { %1351 = vmatpush3.msra.mxu1 %v486_v28  ;;  %1308 = vmatprep.subr.mxu0 %v435_v29  ;;  %v354_v27 = vld [vmem:[%s1704_s15 + $0x40] sm:$0xff]  ;;  %v399_v29 = vld [vmem:[%s1704_s15 + $0x1a8] sm:$0xff] }
  0x7f   : > { %1352 = vmatprep.subr.mxu1 %v531_v30  ;;  %1309 = vmatpush3.msra.mxu0 %v387_v31  ;;  %v450_v28 = vld [vmem:[%s1704_s15 + $0x340] sm:$0xff]  ;;  %v495_v30 = vld [vmem:[%s1704_s15 + $0x4a8] sm:$0xff] }
  0x80   : > { %1353 = vmatpush3.msra.mxu1 %v483_v32  ;;  %1310 = vmatprep.subr.mxu0 %v432_v33  ;;  %v351_v31 = vld [vmem:[%s1704_s15 + $0x28] sm:$0xff]  ;;  %v396_v33 = vld [vmem:[%s1704_s15 + $0x190] sm:$0xff] }
  0x81   : > { %1354 = vmatprep.subr.mxu1 %v528_v34  ;;  %1311 = vmatpush3.msra.mxu0 %v384_v35  ;;  %v447_v32 = vld [vmem:[%s1704_s15 + $0x328] sm:$0xff]  ;;  %v492_v34 = vld [vmem:[%s1704_s15 + $0x490] sm:$0xff] }
  0x82   : > { %1355 = vmatpush3.msra.mxu1 %v480_v36  ;;  %1312 = vmatprep.subr.mxu0 %v429_v37  ;;  %v348_v35 = vld [vmem:[%s1704_s15 + $0x10] sm:$0xff] }
  0x83   : > { %1356 = vmatprep.subr.mxu1 %v525_v38  ;;  %1313 = vmatpush3.msra.mxu0 %v381_v39  ;;  %v444_v36 = vld [vmem:[%s1704_s15 + $0x310] sm:$0xff]  ;;  %v319_v38 = vld [vmem:[#allocation2 + $0x8] sm:$0xff] }
  0x84   : > { %1357 = vmatpush3.msra.mxu1 %v477_v40  ;;  %1314 = vmatprep.subr.mxu0 %v426_v41 }
  0x85   : > { %1358 = vmatprep.subr.mxu1 %v522_v42  ;;  %1315 = vmatpush3.msra.mxu0 %v378_v43 }
  0x86   : > { %1359 = vmatpush3.msra.mxu1 %v474_v44  ;;  %1316 = vmatprep.subr.mxu0 %v423_v45  ;;  %v321_v44 = vld [vmem:[#allocation2 + $0x18] sm:$0xff] }
  0x87   : > { %1360 = vmatprep.subr.mxu1 %v519_v46  ;;  %1317 = vmatpush3.msra.mxu0 %v375_v47 }
  0x88   : > { %1361 = vmatpush3.msra.mxu1 %v471_v48  ;;  %1318 = vmatprep.subr.mxu0 %v420_v49  ;;  %v322_v48 = vld [vmem:[#allocation2 + $0x20] sm:$0xff] }
  0x89   : > { %1362 = vmatprep.subr.mxu1 %v516_v50  ;;  %1319 = vmatpush3.msra.mxu0 %v372_v51 }
  0x8a   : > { %1363 = vmatpush3.msra.mxu1 %v468_v52  ;;  %1320 = vmatprep.subr.mxu0 %v417_v53 }
  0x8b   : > { %1364 = vmatprep.subr.mxu1 %v513_v54  ;;  %608 = vmatprep.mubr.f32.mxu0 %v1888_v55  ;;  %v324_v54 = vld [vmem:[#allocation2 + $0x30] sm:$0xff] }
  0x8c   : > { %697 = vmatprep.mubr.f32.mxu1 %v1891_v56  ;;  %1321 = vmatpush3.msra.mxu0 %v369_v57 }
  0x8d   : > { %1365 = vmatpush3.msra.mxu1 %v465_v58  ;;  %609 = vmatmul.mubr.f32.gmra.mxu0 %v1896_v59  ;;  %v325_v58 = vld [vmem:[#allocation2 + $0x38] sm:$0xff] }
  0x8e   : > { %698 = vmatmul.mubr.f32.gmra.mxu1 %v1899_v60  ;;  %1322 = vmatprep.subr.mxu0 %v414_v61 }
  0x8f   : > { %1366 = vmatprep.subr.mxu1 %v510_v62  ;;  %1323 = vmatpush3.msra.mxu0 %v366_v63 }
  0x90   : > { %1367 = vmatpush3.msra.mxu1 %v462_v0  ;;  %1324 = vmatprep.subr.mxu0 %v411_v1  ;;  %v327_v0 = vld [vmem:[#allocation2 + $0x48] sm:$0x7] }
  0x91   : > { %1368 = vmatprep.subr.mxu1 %v507_v2  ;;  %614 = vmatprep.mubr.f32.mxu0 %v1912_v3 }
  0x92   : > { %703 = vmatprep.mubr.f32.mxu1 %v1915_v4  ;;  %1325 = vmatpush3.msra.mxu0 %v363_v5 }
  0x93   : > { %1369 = vmatpush3.msra.mxu1 %v459_v6  ;;  %615 = vmatmul.mubr.f32.gmra.mxu0 %v1920_v7 }
  0x94   : > { %704 = vmatmul.mubr.f32.gmra.mxu1 %v1923_v8  ;;  %1326 = vmatprep.subr.mxu0 %v408_v9 }
  0x95   : > { %1370 = vmatprep.subr.mxu1 %v504_v10  ;;  %1327 = vmatpush3.msra.mxu0 %v360_v11 }
  0x96   : > { %1371 = vmatpush3.msra.mxu1 %v456_v12  ;;  %1328 = vmatprep.subr.mxu0 %v405_v13 }
  0x97   : > { %1372 = vmatprep.subr.mxu1 %v501_v14  ;;  %620 = vmatprep.mubr.f32.mxu0 %v343_v15 }
  0x98   : > { %709 = vmatprep.mubr.f32.mxu1 %v345_v17  ;;  %1329 = vmatpush3.msra.mxu0 %v357_v21 }
  0x99   : > { %1373 = vmatpush3.msra.mxu1 %v453_v22  ;;  %621 = vmatmul.mubr.f32.gmra.mxu0 %v342_v23 }
  0x9a   : > { %710 = vmatmul.mubr.f32.gmra.mxu1 %v344_v24  ;;  %1330 = vmatprep.subr.mxu0 %v402_v25 }
  0x9b   : > { %1374 = vmatprep.subr.mxu1 %v498_v26  ;;  %1331 = vmatpush3.msra.mxu0 %v354_v27 }
  0x9c   : > { %1375 = vmatpush3.msra.mxu1 %v450_v28  ;;  %1332 = vmatprep.subr.mxu0 %v399_v29  ;;  %v323_v28 = vld [vmem:[#allocation2 + $0x28] sm:$0xff] }
  0x9d   : > { %1376 = vmatprep.subr.mxu1 %v495_v30  ;;  %1333 = vmatpush3.msra.mxu0 %v351_v31 }
  0x9e   : > { %1377 = vmatpush3.msra.mxu1 %v447_v32  ;;  %1334 = vmatprep.subr.mxu0 %v396_v33 }
  0x9f   : > { %1378 = vmatprep.subr.mxu1 %v492_v34  ;;  %1335 = vmatpush3.msra.mxu0 %v348_v35 }
  0xa0   : > { %780 = vmatprep.mubr.f32.mxu0 %v1837_v16  ;;  %1379 = vmatpush3.msra.mxu1 %v444_v36 }
  0xa1   : > { %865 = vmatprep.mubr.f32.mxu1 %v1841_v18  ;;  %781 = vmatmul.mubr.f32.vlgmr.msra.gmra.mxu0 %v1844_v19  ;;  %v318_v18 = vld [vmem:[#allocation2] sm:$0xff] }
  0xa2   : > { %866 = vmatmul.mubr.f32.vlgmr.msra.gmra.mxu1 %v1847_v20  ;;  %785 = vmatprep.mubr.f32.mxu0 %v1888_v55 }
  0xa3   : > { %870 = vmatprep.mubr.f32.mxu1 %v1891_v56 }
  0xa5   : > { %786 = vmatmul.mubr.f32.gmra.mxu0 %v1896_v59 }
  0xa6   : > { %871 = vmatmul.mubr.f32.gmra.mxu1 %v1899_v60  ;;  %790 = vmatprep.mubr.f32.mxu0 %v1912_v3 }
  0xa7   : > { %875 = vmatprep.mubr.f32.mxu1 %v1915_v4  ;;  %v328_v4 = vld [vmem:[#allocation2 + $0x50] sm:$0x7] }
  0xa9   : > { %791 = vmatmul.mubr.f32.gmra.mxu0 %v1920_v7 }
  0xaa   : > { %876 = vmatmul.mubr.f32.gmra.mxu1 %v1923_v8  ;;  %795 = vmatprep.mubr.f32.mxu0 %v343_v15  ;;  %v320_v15 = vld [vmem:[#allocation2 + $0x10] sm:$0xff] }
  0xab   : > { %880 = vmatprep.mubr.f32.mxu1 %v345_v17 }
  0xad   : > { %796 = vmatmul.mubr.f32.gmra.mxu0 %v342_v23 }
  0xae   : > { %881 = vmatmul.mubr.f32.gmra.mxu1 %v344_v24 }
 0x139   : > { %v604_v16 = vpop.f32.mrf.mxu0 }
 0x13a   : > { %v693_v19 = vpop.f32.mrf.mxu1 }
 0x13b   : > { %v694_v20 = vadd.f32 %v693_v19, %v604_v16  ;;  %v606_v37 = vpop.f32.mrf.mxu0  ;;  %v326_v16 = vld [vmem:[#allocation2 + $0x40] sm:$0xff] }
 0x13c   : > { %v695_v39 = vpop.f32.mrf.mxu1 }
 0x13d   : > { %v886_v40 = vadd.f32 %v694_v20, %v318_v18  ;;  %v696_v41 = vadd.f32 %v695_v39, %v606_v37 }
 0x13f   : > { %898 = vst [vmem:[#allocation2] sm:$0xff] %v886_v40  ;;  %v887_v42 = vadd.f32 %v696_v41, %v319_v38 }
 0x141   : > { %899 = vst [vmem:[#allocation2 + $0x8] sm:$0xff] %v887_v42  ;;  %v329_v42 = vld [vmem:[#allocation2 + $0x58] sm:$0x7] }
 0x14d   : > { %v610_v43 = vpop.f32.mrf.mxu0 }
 0x14e   : > { %v699_v45 = vpop.f32.mrf.mxu1 }
 0x14f   : > { %v700_v46 = vadd.f32 %v699_v45, %v610_v43  ;;  %v612_v47 = vpop.f32.mrf.mxu0 }
 0x150   : > { %v701_v49 = vpop.f32.mrf.mxu1 }
 0x151   : > { %v889_v50 = vadd.f32 %v700_v46, %v321_v44  ;;  %v702_v51 = vadd.f32 %v701_v49, %v612_v47 }
 0x153   : > { %902 = vst [vmem:[#allocation2 + $0x18] sm:$0xff] %v889_v50  ;;  %v890_v52 = vadd.f32 %v702_v51, %v322_v48  ;;  %v616_v53 = vpop.f32.mrf.mxu0 }
 0x154   : > { %v705_v55 = vpop.f32.mrf.mxu1 }
 0x155   : > { %903 = vst [vmem:[#allocation2 + $0x20] sm:$0xff] %v890_v52  ;;  %v706_v56 = vadd.f32 %v705_v55, %v616_v53  ;;  %v618_v57 = vpop.f32.mrf.mxu0 }
 0x156   : > { %v707_v59 = vpop.f32.mrf.mxu1 }
 0x157   : > { %v892_v60 = vadd.f32 %v706_v56, %v324_v54  ;;  %v708_v61 = vadd.f32 %v707_v59, %v618_v57 }
 0x159   : > { %905 = vst [vmem:[#allocation2 + $0x30] sm:$0xff] %v892_v60  ;;  %v893_v62 = vadd.f32 %v708_v61, %v325_v58  ;;  %v622_v63 = vpop.f32.mrf.mxu0 }
 0x15a   : > { %v711_v1 = vpop.f32.mrf.mxu1 }
 0x15b   : > { %906 = vst [vmem:[#allocation2 + $0x38] sm:$0xff] %v893_v62  ;;  %v712_v2 = vadd.f32 %v711_v1, %v622_v63  ;;  %v624_v3 = vpop.f32.mrf.mxu0 }
 0x15c   : > { %v713_v5 = vpop.f32.mrf.mxu1 }
 0x15d   : > { %v895_v6 = vadd.f32 %v712_v2, %v327_v0  ;;  %v714_v7 = vadd.f32 %v713_v5, %v624_v3 }
 0x15f   : > { %908 = vst [vmem:[#allocation2 + $0x48] sm:$0x7] %v895_v6  ;;  %v896_v8 = vadd.f32 %v714_v7, %v328_v4 }
 0x161   : > { %909 = vst [vmem:[#allocation2 + $0x50] sm:$0x7] %v896_v8  ;;  %v1336_v9 = vpop.f32.mrf.mxu0 }
 0x162   : > { %v1380_v10 = vpop.f32.mrf.mxu1 }
 0x163   : > { %v1337_v11 = vpop.f32.mrf.mxu0 }
 0x164   : > { %v1381_v12 = vpop.f32.mrf.mxu1  ;;  %v1338_v13 = vadd.f32 %v1337_v11, %v1336_v9 }
 0x165   : > { %v1382_v14 = vadd.f32 %v1381_v12, %v1380_v10  ;;  %v1339_v17 = vpop.f32.mrf.mxu0 }
 0x166   : > { %v1383_v21 = vpop.f32.mrf.mxu1 }
 0x167   : > { %v868_v22 = vadd.f32 %v1382_v14, %v1338_v13  ;;  %v1340_v23 = vpop.f32.mrf.mxu0 }
 0x168   : > { %v1384_v24 = vpop.f32.mrf.mxu1  ;;  %v1341_v26 = vadd.f32 %v1340_v23, %v1339_v17 }
 0x169   : > { %v888_v25 = vadd.f32 %v868_v22, %v320_v15  ;;  %v1385_v27 = vadd.f32 %v1384_v24, %v1383_v21  ;;  %v1342_v29 = vpop.f32.mrf.mxu0 }
 0x16a   : > { %v1386_v30 = vpop.f32.mrf.mxu1 }
 0x16b   : > { %901 = vst.msk [vmem:[#allocation2 + $0x10] sm:$0xff] %vm900_vm2, %v888_v25  ;;  %v873_v31 = vadd.f32 %v1385_v27, %v1341_v26  ;;  %v1343_v32 = vpop.f32.mrf.mxu0 }
 0x16c   : > { %v1387_v33 = vpop.f32.mrf.mxu1  ;;  %v1344_v35 = vadd.f32 %v1343_v32, %v1342_v29 }
 0x16d   : > { %v891_v34 = vadd.f32 %v873_v31, %v323_v28  ;;  %v1388_v36 = vadd.f32 %v1387_v33, %v1386_v30  ;;  %v1345_v18 = vpop.f32.mrf.mxu0 }
 0x16e   : > { %v1389_v19 = vpop.f32.mrf.mxu1 }
 0x16f   : > { %904 = vst.msk [vmem:[#allocation2 + $0x28] sm:$0xff] %vm900_vm2, %v891_v34  ;;  %v878_v20 = vadd.f32 %v1388_v36, %v1344_v35  ;;  %v1346_v37 = vpop.f32.mrf.mxu0 }
 0x170   : > { %v1390_v38 = vpop.f32.mrf.mxu1  ;;  %v1347_v40 = vadd.f32 %v1346_v37, %v1345_v18 }
 0x171   : > { %v894_v39 = vadd.f32 %v878_v20, %v326_v16  ;;  %v1391_v41 = vadd.f32 %v1390_v38, %v1389_v19 }
 0x173   : > { %907 = vst.msk [vmem:[#allocation2 + $0x40] sm:$0xff] %vm900_vm2, %v894_v39  ;;  %v883_v43 = vadd.f32 %v1391_v41, %v1347_v40  ;;  %915 = sbr.rel (%p1295_p13) target bundleno = 625 (0x271), region = 67 }
 0x175   : > { %v897_v44 = vadd.f32 %v883_v43, %v329_v42 }
 0x177   : > { %911 = vst.msk [vmem:[#allocation2 + $0x58] sm:$0x7] %vm910_vm3, %v897_v44 }
 0x178   : > { %v959_v45 = vld [vmem:[%s2134_s1 + $0xf8] sm:$0xff]  ;;  %v958_v47 = vld [vmem:[%s2134_s1 + $0xf0] sm:$0xff]  ;;  %v1589_v49 = vmov 0   ;;  %v957_v50 = vld [vmem:[%s2134_s1 + $0xe8] sm:$0xff]  ;;  %vm1182_vm4 = vcmask 31744   ;;  %vm1186_vm5 = vcmask 26624  }
 0x179   : > { %v943_v46 = vld [vmem:[%s2134_s1 + $0x78] sm:$0xff]  ;;  %1392 = vmatprep.subr.mxu0 %v959_v45  ;;  %v942_v48 = vld [vmem:[%s2134_s1 + $0x70] sm:$0xff]  ;;  %1530 = vset.pattern.permute.xlu0 %v1589_v49  ;;  %v941_v51 = vld [vmem:[%s2134_s1 + $0x68] sm:$0xff] }
 0x17a   : > { %1393 = vmatpush3.msra.mxu0 %v943_v46  ;;  %1531 = vset.pattern.permute.xlu1 %v1589_v49  ;;  %v956_v52 = vld [vmem:[%s2134_s1 + $0xe0] sm:$0xff]  ;;  %v955_v54 = vld [vmem:[%s2134_s1 + $0xd8] sm:$0xff]  ;;  %v966_v57 = vld [vmem:[%s2134_s1 + $0x130] sm:$0xff] }
 0x17b   : > { %1394 = vmatprep.subr.mxu0 %v958_v47  ;;  %v940_v53 = vld [vmem:[%s2134_s1 + $0x60] sm:$0xff]  ;;  %v967_v55 = vld [vmem:[%s2134_s1 + $0x138] sm:$0xff]  ;;  %v954_v58 = vld [vmem:[%s2134_s1 + $0xd0] sm:$0xff] }
 0x17c   : > { %1395 = vmatpush3.msra.mxu0 %v942_v48  ;;  %v939_v56 = vld [vmem:[%s2134_s1 + $0x58] sm:$0xff]  ;;  %1448 = vmatprep.subr.mxu1 %v967_v55  ;;  %v965_v59 = vld [vmem:[%s2134_s1 + $0x128] sm:$0xff]  ;;  %v938_v60 = vld [vmem:[%s2134_s1 + $0x50] sm:$0xff] }
 0x17d   : > { %1396 = vmatprep.subr.mxu0 %v957_v50  ;;  %1449 = vmatpush3.msra.mxu1 %v967_v55  ;;  %v953_v61 = vld [vmem:[%s2134_s1 + $0xc8] sm:$0xff]  ;;  %v964_v62 = vld [vmem:[%s2134_s1 + $0x120] sm:$0xff]  ;;  %v963_v1 = vld [vmem:[%s2134_s1 + $0x118] sm:$0xff] }
 0x17e   : > { %1397 = vmatpush3.msra.mxu0 %v941_v51  ;;  %1450 = vmatprep.subr.mxu1 %v966_v57  ;;  %v937_v63 = vld [vmem:[%s2134_s1 + $0x48] sm:$0xff]  ;;  %v952_v0 = vld [vmem:[%s2134_s1 + $0xc0] sm:$0xff]  ;;  %v951_v3 = vld [vmem:[%s2134_s1 + $0xb8] sm:$0xff] }
 0x17f   : > { %1398 = vmatprep.subr.mxu0 %v956_v52  ;;  %1451 = vmatpush3.msra.mxu1 %v966_v57  ;;  %v936_v2 = vld [vmem:[%s2134_s1 + $0x40] sm:$0xff]  ;;  %v962_v4 = vld [vmem:[%s2134_s1 + $0x110] sm:$0xff]  ;;  %v935_v5 = vld [vmem:[%s2134_s1 + $0x38] sm:$0xff] }
 0x180   : > { %1399 = vmatpush3.msra.mxu0 %v940_v53  ;;  %1452 = vmatprep.subr.mxu1 %v965_v59  ;;  %v950_v6 = vld [vmem:[%s2134_s1 + $0xb0] sm:$0xff]  ;;  %v961_v7 = vld [vmem:[%s2134_s1 + $0x108] sm:$0xff]  ;;  %v960_v12 = vld [vmem:[%s2134_s1 + $0x100] sm:$0xff] }
 0x181   : > { %1400 = vmatprep.subr.mxu0 %v955_v54  ;;  %1453 = vmatpush3.msra.mxu1 %v965_v59  ;;  %v934_v8 = vld [vmem:[%s2134_s1 + $0x30] sm:$0xff]  ;;  %v917_v9 = vld [vmem:[#allocation2 + $0x8] sm:$0xff]  ;;  %v948_v13 = vld [vmem:[%s2134_s1 + $0xa0] sm:$0xff] }
 0x182   : > { %1401 = vmatpush3.msra.mxu0 %v939_v56  ;;  %1454 = vmatprep.subr.mxu1 %v964_v62  ;;  %v949_v10 = vld [vmem:[%s2134_s1 + $0xa8] sm:$0xff]  ;;  %v932_v14 = vld [vmem:[%s2134_s1 + $0x20] sm:$0xff]  ;;  %v918_v15 = vld [vmem:[#allocation2 + $0x10] sm:$0xff] }
 0x183   : > { %1402 = vmatprep.subr.mxu0 %v954_v58  ;;  %1455 = vmatpush3.msra.mxu1 %v964_v62  ;;  %v933_v11 = vld [vmem:[%s2134_s1 + $0x28] sm:$0xff]  ;;  %v947_v17 = vld [vmem:[%s2134_s1 + $0x98] sm:$0xff]  ;;  %v924_v23 = vld [vmem:[#allocation2 + $0x40] sm:$0xff] }
 0x184   : > { %1403 = vmatpush3.msra.mxu0 %v938_v60  ;;  %1456 = vmatprep.subr.mxu1 %v963_v1  ;;  %v921_v21 = vld [vmem:[#allocation2 + $0x28] sm:$0xff]  ;;  %v931_v22 = vld [vmem:[%s2134_s1 + $0x18] sm:$0xff]  ;;  %v946_v24 = vld [vmem:[%s2134_s1 + $0x90] sm:$0xff] }
 0x185   : > { %1404 = vmatprep.subr.mxu0 %v953_v61  ;;  %1457 = vmatpush3.msra.mxu1 %v963_v1  ;;  %v1154_v25 = vld [vmem:[%s2136_s3] sm:$0xff]  ;;  %v930_v26 = vld [vmem:[%s2134_s1 + $0x10] sm:$0xff]  ;;  %v945_v28 = vld [vmem:[%s2134_s1 + $0x88] sm:$0xff] }
 0x186   : > { %1405 = vmatpush3.msra.mxu0 %v937_v63  ;;  %1458 = vmatprep.subr.mxu1 %v962_v4  ;;  %v1156_v27 = vld [vmem:[%s2136_s3 + $0x10] sm:$0xff]  ;;  %v927_v29 = vld [vmem:[#allocation2 + $0x58] sm:$0x7]  ;;  %v929_v30 = vld [vmem:[%s2134_s1 + $0x8] sm:$0xff] }
 0x187   : > { %1406 = vmatprep.subr.mxu0 %v952_v0  ;;  %1459 = vmatpush3.msra.mxu1 %v962_v4  ;;  %v944_v31 = vld [vmem:[%s2134_s1 + $0x80] sm:$0xff]  ;;  %v1155_v32 = vld [vmem:[%s2136_s3 + $0x8] sm:$0xff]  ;;  %v1157_v34 = vld [vmem:[%s2136_s3 + $0x18] sm:$0x7] }
 0x188   : > { %1407 = vmatpush3.msra.mxu0 %v936_v2  ;;  %1460 = vmatprep.subr.mxu1 %v961_v7  ;;  %v928_v33 = vld [vmem:[%s2134_s1] sm:$0xff]  ;;  %v919_v16 = vld [vmem:[#allocation2 + $0x18] sm:$0xff]  ;;  %v922_v19 = vld [vmem:[#allocation2 + $0x30] sm:$0xff] }
 0x189   : > { %1408 = vmatprep.subr.mxu0 %v951_v3  ;;  %1044 = vmatprep.mubr.f32.mxu0 %v917_v9  ;;  %v916_v35 = vld [vmem:[#allocation2] sm:$0xff]  ;;  %v923_v18 = vld [vmem:[#allocation2 + $0x38] sm:$0xff]  ;;  %v926_v20 = vld [vmem:[#allocation2 + $0x50] sm:$0x7] }
 0x18a   : > { %1409 = vmatpush3.msra.mxu0 %v935_v5  ;;  %1461 = vmatpush3.msra.mxu1 %v961_v7  ;;  %v920_v36 = vld [vmem:[#allocation2 + $0x20] sm:$0xff]  ;;  %v925_v37 = vld [vmem:[#allocation2 + $0x48] sm:$0x7] }
 0x18b   : > { %1410 = vmatprep.subr.mxu0 %v950_v6  ;;  %1462 = vmatprep.subr.mxu1 %v960_v12 }
 0x18c   : > { %1411 = vmatpush3.msra.mxu0 %v934_v8  ;;  %1463 = vmatpush3.msra.mxu1 %v960_v12 }
 0x18d   : > { %1412 = vmatprep.subr.mxu0 %v949_v10  ;;  %1464 = vmatprep.mubr.msk.f32.mxu1 %vm900_vm2, %v918_v15 }
 0x18e   : > { %1413 = vmatpush3.msra.mxu0 %v933_v11  ;;  %1465 = vmatmul.mubr.msk.f32.vlgmr.msra.gmra.mxu1 %vm900_vm2, %v921_v21 }
 0x18f   : > { %1414 = vmatprep.subr.mxu0 %v948_v13  ;;  %1467 = vmatprep.mubr.msk.f32.mxu1 %vm900_vm2, %v924_v23 }
 0x190   : > { %1415 = vmatpush3.msra.mxu0 %v932_v14  ;;  %1160 = vperm.xlu0 %1530, %v1154_v25  }
 0x191   : > { %1416 = vmatprep.subr.mxu0 %v947_v17  ;;  %1170 = vperm.xlu1 %1531, %v1156_v27  }
 0x192   : > { %1417 = vmatpush3.msra.mxu0 %v931_v22  ;;  %1468 = vmatmul.mubr.msk.f32.gmra.mxu1 %vm900_vm2, %v927_v29 }
 0x193   : > { %1418 = vmatprep.subr.mxu0 %v946_v24 }
 0x194   : > { %1419 = vmatpush3.msra.mxu0 %v930_v26  ;;  %1165 = vperm.xlu0 %1530, %v1155_v32  }
 0x195   : > { %1420 = vmatprep.subr.mxu0 %v945_v28  ;;  %1175 = vperm.xlu1 %1531, %v1157_v34  }
 0x196   : > { %1421 = vmatpush3.msra.mxu0 %v929_v30 }
 0x197   : > { %1422 = vmatprep.subr.mxu0 %v944_v31 }
 0x198   : > { %1423 = vmatpush3.msra.mxu0 %v928_v33 }
 0x199   : > { %1045 = vmatmul.mubr.f32.vlgmr.msra.gmra.mxu0 %v916_v35 }
 0x19a   : > { %1049 = vmatprep.mubr.f32.mxu0 %v920_v36 }
 0x19d   : > { %1050 = vmatmul.mubr.f32.gmra.mxu0 %v919_v16 }
 0x19e   : > { %1054 = vmatprep.mubr.f32.mxu0 %v923_v18 }
 0x1a1   : > { %1055 = vmatmul.mubr.f32.gmra.mxu0 %v922_v19 }
 0x1a2   : > { %1059 = vmatprep.mubr.f32.mxu0 %v926_v20 }
 0x1a5   : > { %1060 = vmatmul.mubr.f32.gmra.mxu0 %v925_v37 }
 0x20b   : > { %v1161_v43 = vpop.permute.xlu0 %1160 }
 0x20c   : > { %v1171_v61 = vpop.permute.xlu1 %1170 }
 0x20f   : > { %v1166_v53 = vpop.permute.xlu0 %1165 }
 0x210   : > { %v1176_v4 = vpop.permute.xlu1 %1175 }
 0x24e   : > { %v1466_v38 = vpop.f32.mrf.mxu1 }
 0x250   : > { %v1131_v41 = vpop.f32.mrf.mxu1 }
 0x252   : > { %v1469_v47 = vpop.f32.mrf.mxu1 }
 0x254   : > { %v1141_v55 = vpop.f32.mrf.mxu1 }
 0x259   : > { %v1424_v39 = vpop.f32.mrf.mxu0 }
 0x25b   : > { %v1425_v40 = vpop.f32.mrf.mxu0 }
 0x25c   : > { %v1426_v42 = vadd.f32 %v1425_v40, %v1424_v39 }
 0x25d   : > { %v1427_v44 = vpop.f32.mrf.mxu0 }
 0x25e   : > { %v1132_v45 = vadd.f32 %v1426_v42, %v1131_v41 }
 0x25f   : > { %v1428_v46 = vpop.f32.mrf.mxu0 }
 0x260   : > { %v1150_v48 = vmul.f32 0.0125, %v1132_v45  ;;  %v1429_v49 = vadd.f32 %v1428_v46, %v1427_v44 }
 0x261   : > { %v1430_v50 = vpop.f32.mrf.mxu0 }
 0x262   : > { %v1137_v51 = vadd.f32 %v1466_v38, %v1429_v49  ;;  %v1178_v52 = vadd.f32 %v1161_v43, %v1150_v48 }
 0x263   : > { %v1431_v54 = vpop.f32.mrf.mxu0 }
 0x264   : > { %1183 = vst.msk [vmem:[%s1699_s25] sm:$0xff] %vm1182_vm4, %v1178_v52  ;;  %v1432_v56 = vadd.f32 %v1431_v54, %v1430_v50  ;;  %v1151_v57 = vmul.f32 0.0125, %v1137_v51 }
 0x265   : > { %v1433_v58 = vpop.f32.mrf.mxu0 }
 0x266   : > { %v1179_v59 = vadd.f32 %v1166_v53, %v1151_v57  ;;  %v1142_v60 = vadd.f32 %v1432_v56, %v1141_v55 }
 0x267   : > { %v1434_v62 = vpop.f32.mrf.mxu0 }
 0x268   : > { %1184 = vst.msk [vmem:[%s1699_s25 + $0x8] sm:$0xff] %vm1182_vm4, %v1179_v59  ;;  %v1152_v63 = vmul.f32 0.0125, %v1142_v60  ;;  %v1435_v0 = vadd.f32 %v1434_v62, %v1433_v58 }
 0x26a   : > { %v1180_v1 = vadd.f32 %v1171_v61, %v1152_v63  ;;  %v1147_v2 = vadd.f32 %v1469_v47, %v1435_v0 }
 0x26c   : > { %1185 = vst.msk [vmem:[%s1699_s25 + $0x10] sm:$0xff] %vm1182_vm4, %v1180_v1  ;;  %v1153_v3 = vmul.f32 0.0125, %v1147_v2 }
 0x26e   : > { %v1181_v5 = vadd.f32 %v1176_v4, %v1153_v3 }
 0x270   : > { %1187 = vst.msk [vmem:[%s1699_s25 + $0x18] sm:$0x7] %vm1186_vm5, %v1181_v5 }
 0x271 PF: > { %s14_s21 = sadd.s32 1, %s1586_s21   ;;  %s2138_s15 = smov %s1566_s16 }
 0x272   : > { %p11_p0 = scmp.ge.s32.totalorder %s14_s21, 10   ;;  %s2139_s16 = smov %s1664_s26 }
 0x273   : > { %s2140_s17 = smov %s1578_s19  ;;  %s2141_s18 = smov %s1582_s20 }
 0x274   : > { %s2142_s19 = smov %s2145_s22  ;;  %s2143_s20 = smov %s2149_s23 }
 0x275   :  { %13 = sbr.rel (!%p11_p0) target bundleno = 4 (0x4), region = 105 }

</bundles_post_ra>
